<compile_context>
chip_gen: v7x
topology: tpu7x:2x2x1
jax: 0.10.0
libtpu: 0.0.40
codegen_flags: <defaults>
</compile_context>

<pallas_src>
import numpy as np
import jax
import jax.numpy as jnp
from jax.experimental import pallas as pl
from jax.experimental.pallas import tpu as pltpu


# ----------------------------------------------------------------------------- config helpers

def calc_output_padding_1d(length, target, kernel_size, stride, padding):
    """Pick (padding, output_padding) so ConvTranspose1d maps `length` -> `target`."""
    candidates = [padding] + [p for p in range(kernel_size) if p != padding]
    for in_pad in candidates:
        out_pad = target - ((length - 1) * stride - 2 * in_pad + kernel_size)
        if 0 <= out_pad < stride:
            return in_pad, out_pad
    raise ValueError("no valid (padding, output_padding) for this layer")


def build_layer_cfgs(target_shapes, kernel_size=3, stride=2, padding=0):
    """Mirrors the torch __init__: reverse shapes, skip identity layers, size each block."""
    shapes = list(reversed(list(target_shapes)))
    cfgs = []
    for i in range(len(shapes) - 1):
        c_in, l_in = shapes[i]
        c_out, l_out = shapes[i + 1]
        if c_in == c_out and l_in == l_out:
            continue  # "Skipping transpose convolution"
        in_pad, out_pad = calc_output_padding_1d(l_in, l_out, kernel_size, stride, padding)
        cfgs.append(dict(C_in=c_in, C_out=c_out, L_in=l_in, L_out=l_out, K=kernel_size,
                         stride=stride, padding=in_pad, out_pad=out_pad,
                         act=(i < len(shapes) - 2)))
    return cfgs


def init_params(key, cfgs):
    """Deterministic synthetic weights + BatchNorm (eval mode, folded to scale/bias)."""
    params = []
    for cfg in cfgs:
        key, k1, k2, k3, k4, k5 = jax.random.split(key, 6)
        # ConvTranspose1d weight stored as (K, C_in, C_out).
        w = 0.3 * jax.random.normal(k1, (cfg["K"], cfg["C_in"], cfg["C_out"]), jnp.float32)
        gamma = 1.0 + 0.1 * jax.random.normal(k2, (cfg["C_out"],), jnp.float32)
        beta = 0.05 * jax.random.normal(k3, (cfg["C_out"],), jnp.float32)
        rmean = 0.1 * jax.random.normal(k4, (cfg["C_out"],), jnp.float32)
        rvar = 1.0 + 0.1 * jax.random.uniform(k5, (cfg["C_out"],), jnp.float32)
        eps = 1e-5
        scale = gamma / jnp.sqrt(rvar + eps)
        bias = beta - rmean * scale
        params.append((np.asarray(w, np.float32),
                       np.asarray(scale, np.float32),
                       np.asarray(bias, np.float32)))
    return params


# ----------------------------------------------------------------------------- host-side folding

def build_dense_layer(w, scale, bias, cfg):
    """Fold ConvTranspose1d (weights w: (K, C_in, C_out)) + BN scale/bias into one dense
    operator acting on NLC-flattened activations:  y_flat = x_flat @ Wd + bd."""
    K, C_in, C_out = w.shape
    L_in, L_out = cfg["L_in"], cfg["L_out"]
    stride, pad = cfg["stride"], cfg["padding"]
    Wd = np.zeros((L_in * C_in, L_out * C_out), np.float32)
    for i in range(L_in):
        for k in range(K):
            l = i * stride - pad + k
            if 0 <= l < L_out:
                Wd[i * C_in:(i + 1) * C_in, l * C_out:(l + 1) * C_out] += w[k] * scale[None, :]
    bd = np.tile(bias, L_out).reshape(1, L_out * C_out).astype(np.float32)
    return Wd, bd


def build_head_constants(l_out, hidden_size):
    """0/1 matrices for the grouped log-softmax head in the flattened (B, L*C) layout."""
    n = l_out * hidden_size
    n_act = hidden_size - 1
    # ssel[c]: (n, l_out) selects channel c of every position:  (y @ ssel[c])[b, l] = y[b, l*C + c]
    ssel = np.zeros((n_act, n, l_out), np.float32)
    for c in range(n_act):
        for l in range(l_out):
            ssel[c, l * hidden_size + c, l] = 1.0
    # spread: (l_out, n) broadcasts a per-position value back to all channels of that position.
    spread = np.zeros((l_out, n), np.float32)
    for l in range(l_out):
        spread[l, l * hidden_size:(l + 1) * hidden_size] = 1.0
    # act_mask: 1.0 on activation-logit columns, 0.0 on the duration column of each position.
    act_mask = np.ones((1, n), np.float32)
    act_mask[0, hidden_size - 1::hidden_size] = 0.0
    return ssel, spread, act_mask


# ----------------------------------------------------------------------------- kernel

def make_decoder_kernel(cfgs, hidden_size):
    n_layers = len(cfgs)
    n_act = hidden_size - 1

    def kernel(*refs):
        x_ref = refs[0]
        layer_refs = refs[1:1 + 2 * n_layers]
        ssel_ref, spread_ref, mask_ref = refs[1 + 2 * n_layers:1 + 2 * n_layers + 3]
        out_ref = refs[-1]

        # Decoder chain: one dense matmul (ConvTranspose1d + folded BN) per layer.
        y = x_ref[...]                                    # (B, L0*C0) f32
        for li, cfg in enumerate(cfgs):
            w_ref = layer_refs[2 * li]
            b_ref = layer_refs[2 * li + 1]
            y = jnp.dot(y, w_ref[...], preferred_element_type=jnp.float32) + b_ref[...]
            if cfg["act"]:                                # LeakyReLU(0.01); Dropout = identity (eval)
                y = jnp.where(y > 0, y, 0.01 * y)
        # y: (B, Lf*Cf), lane-dense flattened NLC layout.

        # Head: per-position LogSoftmax over the first hidden_size-1 channels,
        # stable log(sigmoid) on the duration channel.  Exact per-group max via
        # channel-extraction matmuls (no masked -1e30 trick).
        yc = [jnp.dot(y, ssel_ref[c], preferred_element_type=jnp.float32)
              for c in range(n_act)]                      # n_act x (B, Lf)
        gmax = yc[0]
        for c in range(1, n_act):
            gmax = jnp.maximum(gmax, yc[c])
        gsum = jnp.exp(yc[0] - gmax)
        for c in range(1, n_act):
            gsum = gsum + jnp.exp(yc[c] - gmax)
        lse = gmax + jnp.log(gsum)                        # (B, Lf)
        lse_full = jnp.dot(lse, spread_ref[...],
                           preferred_element_type=jnp.float32)   # (B, Lf*Cf)
        acts_log_probs = y - lse_full

        # log(sigmoid(y)) = min(y, 0) - log(1 + exp(-|y|))   (numerically stable)
        dur_log = jnp.minimum(y, 0.0) - jnp.log(1.0 + jnp.exp(-jnp.abs(y)))

        out_ref[...] = jnp.where(mask_ref[...] != 0.0, acts_log_probs, dur_log)

    return kernel


def decoder_forward(hidden_ncl, dense_params, head_consts, cfgs, hidden_size):
    """hidden_ncl: (B, C0, L0) float32 in the PyTorch NCL convention.
    Returns (B, Lf, hidden_size) log-prob outputs (matches the torch forward)."""
    B = hidden_ncl.shape[0]
    L0, C0 = cfgs[0]["L_in"], cfgs[0]["C_in"]
    Lf, Cf = cfgs[-1]["L_out"], cfgs[-1]["C_out"]
    assert Cf == hidden_size

    # NCL -> NLC -> flattened (B, L0*C0); all layout plumbing stays in the wrapper.
    x = jnp.transpose(hidden_ncl, (0, 2, 1)).reshape(B, L0 * C0).astype(jnp.float32)

    args = [x]
    for (wd, bd) in dense_params:
        args += [wd, bd]
    args += list(head_consts)

    vmem = pl.BlockSpec(memory_space=pltpu.MemorySpace.VMEM)
    out_flat = pl.pallas_call(
        make_decoder_kernel(cfgs, hidden_size),
        out_shape=jax.ShapeDtypeStruct((B, Lf * Cf), jnp.float32),   # lane-dense (B, 128)
        in_specs=[vmem] * len(args),
        out_specs=vmem,
    )(*args)

    return out_flat.reshape(B, Lf, Cf)


# ----------------------------------------------------------------------------- reference

def ref_forward(hidden_ncl, raw_params, cfgs, hidden_size):
    y = np.asarray(hidden_ncl, np.float32)                # (B, C, L)
    for (w, scale, bias), cfg in zip(raw_params, cfgs):
        w = np.asarray(w, np.float32)                     # (K, C_in, C_out)
        scale = np.asarray(scale, np.float32).reshape(-1)
        bias = np.asarray(bias, np.float32).reshape(-1)
        B, C_in, L_in = y.shape
        K, _, C_out = w.shape
        L_out = cfg["L_out"]
        out = np.zeros((B, C_out, L_out), np.float32)
        for n in range(B):
            for i in range(L_in):
                for k in range(K):
                    l = i * cfg["stride"] - cfg["padding"] + k
                    if 0 <= l < L_out:
                        out[n, :, l] += w[k].T @ y[n, :, i]
        out = out * scale[None, :, None] + bias[None, :, None]
        if cfg["act"]:
            out = np.where(out > 0, out, 0.01 * out)
        y = out
    y = np.transpose(y, (0, 2, 1))                        # (B, L, C)
    acts = y[..., :hidden_size - 1]
    dur = y[..., hidden_size - 1:]
    m = acts.max(axis=-1, keepdims=True)
    lse = m + np.log(np.exp(acts - m).sum(axis=-1, keepdims=True))
    acts_lp = acts - lse
    dur_log = np.minimum(dur, 0.0) - np.log1p(np.exp(-np.abs(dur)))
    return np.concatenate([acts_lp, dur_log], axis=-1)


# ----------------------------------------------------------------------------- main

if __name__ == "__main__":
    B = 2
    encoded_size = 8                                       # hidden_size
    # Encoder stage shapes (channels, length); the module reverses this list itself.
    target_shapes = [(8, 16), (8, 8), (8, 3)]

    cfgs = build_layer_cfgs(target_shapes, kernel_size=3, stride=2, padding=0)

    key = jax.random.PRNGKey(0)
    key, pkey, hkey = jax.random.split(key, 3)
    raw_params = init_params(pkey, cfgs)

    # Host-side folding: one dense operator (+ bias row) per ConvTranspose1d+BN layer.
    dense_params = [tuple(jnp.asarray(a) for a in build_dense_layer(w, s, b, cfg))
                    for (w, s, b), cfg in zip(raw_params, cfgs)]
    head_consts = tuple(jnp.asarray(a) for a in
                        build_head_constants(cfgs[-1]["L_out"], encoded_size))

    # hidden: (B, C0, L0) in PyTorch NCL convention
    hidden = jax.random.normal(hkey, (B, cfgs[0]["C_in"], cfgs[0]["L_in"]), jnp.float32)

    out = decoder_forward(hidden, dense_params, head_consts, cfgs, encoded_size)
    out = jax.block_until_ready(out)

    ref = ref_forward(np.asarray(hidden), raw_params, cfgs, encoded_size)

    out_np = np.asarray(out)
    assert out_np.shape == ref.shape == (B, cfgs[-1]["L_out"], encoded_size)
    assert np.all(np.isfinite(out_np))
    assert np.allclose(out_np, ref, atol=2e-2, rtol=2e-2), \
        f"max abs err {np.max(np.abs(out_np - ref))}"

    print("KERNEL_OK")
</pallas_src>

<mosaic_0001>
module attributes {stable_mosaic.version = 11 : i64} {
  func.func @kernel(%arg0: memref<2x24xf32, #tpu.memory_space<vmem>>, %arg1: memref<24x64xf32, #tpu.memory_space<vmem>>, %arg2: memref<1x64xf32, #tpu.memory_space<vmem>>, %arg3: memref<64x128xf32, #tpu.memory_space<vmem>>, %arg4: memref<1x128xf32, #tpu.memory_space<vmem>>, %arg5: memref<7x128x16xf32, #tpu.memory_space<vmem>>, %arg6: memref<16x128xf32, #tpu.memory_space<vmem>>, %arg7: memref<1x128xf32, #tpu.memory_space<vmem>>, %arg8: memref<2x128xf32, #tpu.memory_space<vmem>>) attributes {dimension_semantics = [], scalar_prefetch = 0 : i64, scratch_operands = 0 : i64, tpu.core_type = #tpu.core_type<tc>} {
    %c0 = arith.constant 0 : index
    %c0_0 = arith.constant 0 : index
    %0 = vector.load %arg0[%c0, %c0_0] : memref<2x24xf32, #tpu.memory_space<vmem>>, vector<2x24xf32>
    %c0_1 = arith.constant 0 : index
    %c0_2 = arith.constant 0 : index
    %1 = vector.load %arg1[%c0_1, %c0_2] : memref<24x64xf32, #tpu.memory_space<vmem>>, vector<24x64xf32>
    %cst = arith.constant dense<0.000000e+00> : vector<2x64xf32>
    %2 = tpu.matmul %0, %1, %cst {dimension_numbers = #tpu.dot_dimension_numbers<[1], [0], [0], [1], [0, 0, 1, 1], [], []>} : vector<2x24xf32>, vector<24x64xf32>, vector<2x64xf32> -> vector<2x64xf32>
    %c0_3 = arith.constant 0 : index
    %c0_4 = arith.constant 0 : index
    %3 = vector.load %arg2[%c0_3, %c0_4] : memref<1x64xf32, #tpu.memory_space<vmem>>, vector<1x64xf32>
    %4 = vector.broadcast %3 : vector<1x64xf32> to vector<2x64xf32>
    %5 = arith.addf %2, %4 : vector<2x64xf32>
    %cst_5 = arith.constant 0.000000e+00 : f32
    %6 = vector.broadcast %cst_5 : f32 to vector<2x64xf32>
    %7 = arith.cmpf ogt, %5, %6 : vector<2x64xf32>
    %cst_6 = arith.constant 0.00999999977 : f32
    %8 = vector.broadcast %cst_6 : f32 to vector<2x64xf32>
    %9 = arith.mulf %8, %5 : vector<2x64xf32>
    %10 = arith.select %7, %5, %9 : vector<2x64xi1>, vector<2x64xf32>
    %c0_7 = arith.constant 0 : index
    %c0_8 = arith.constant 0 : index
    %11 = vector.load %arg3[%c0_7, %c0_8] : memref<64x128xf32, #tpu.memory_space<vmem>>, vector<64x128xf32>
    %cst_9 = arith.constant dense<0.000000e+00> : vector<2x128xf32>
    %12 = tpu.matmul %10, %11, %cst_9 {dimension_numbers = #tpu.dot_dimension_numbers<[1], [0], [0], [1], [0, 0, 1, 1], [], []>} : vector<2x64xf32>, vector<64x128xf32>, vector<2x128xf32> -> vector<2x128xf32>
    %c0_10 = arith.constant 0 : index
    %c0_11 = arith.constant 0 : index
    %13 = vector.load %arg4[%c0_10, %c0_11] : memref<1x128xf32, #tpu.memory_space<vmem>>, vector<1x128xf32>
    %14 = vector.broadcast %13 : vector<1x128xf32> to vector<2x128xf32>
    %15 = arith.addf %12, %14 : vector<2x128xf32>
    %c0_12 = arith.constant 0 : index
    %c0_13 = arith.constant 0 : index
    %c0_14 = arith.constant 0 : index
    %16 = vector.load %arg5[%c0_12, %c0_13, %c0_14] : memref<7x128x16xf32, #tpu.memory_space<vmem>>, vector<1x128x16xf32>
    %17 = vector.shape_cast %16 : vector<1x128x16xf32> to vector<128x16xf32>
    %cst_15 = arith.constant dense<0.000000e+00> : vector<2x16xf32>
    %18 = tpu.matmul %15, %17, %cst_15 {dimension_numbers = #tpu.dot_dimension_numbers<[1], [0], [0], [1], [0, 0, 1, 1], [], []>} : vector<2x128xf32>, vector<128x16xf32>, vector<2x16xf32> -> vector<2x16xf32>
    %c1 = arith.constant 1 : index
    %c0_16 = arith.constant 0 : index
    %c0_17 = arith.constant 0 : index
    %19 = vector.load %arg5[%c1, %c0_16, %c0_17] : memref<7x128x16xf32, #tpu.memory_space<vmem>>, vector<1x128x16xf32>
    %20 = vector.shape_cast %19 : vector<1x128x16xf32> to vector<128x16xf32>
    %cst_18 = arith.constant dense<0.000000e+00> : vector<2x16xf32>
    %21 = tpu.matmul %15, %20, %cst_18 {dimension_numbers = #tpu.dot_dimension_numbers<[1], [0], [0], [1], [0, 0, 1, 1], [], []>} : vector<2x128xf32>, vector<128x16xf32>, vector<2x16xf32> -> vector<2x16xf32>
    %c2 = arith.constant 2 : index
    %c0_19 = arith.constant 0 : index
    %c0_20 = arith.constant 0 : index
    %22 = vector.load %arg5[%c2, %c0_19, %c0_20] : memref<7x128x16xf32, #tpu.memory_space<vmem>>, vector<1x128x16xf32>
    %23 = vector.shape_cast %22 : vector<1x128x16xf32> to vector<128x16xf32>
    %cst_21 = arith.constant dense<0.000000e+00> : vector<2x16xf32>
    %24 = tpu.matmul %15, %23, %cst_21 {dimension_numbers = #tpu.dot_dimension_numbers<[1], [0], [0], [1], [0, 0, 1, 1], [], []>} : vector<2x128xf32>, vector<128x16xf32>, vector<2x16xf32> -> vector<2x16xf32>
    %c3 = arith.constant 3 : index
    %c0_22 = arith.constant 0 : index
    %c0_23 = arith.constant 0 : index
    %25 = vector.load %arg5[%c3, %c0_22, %c0_23] : memref<7x128x16xf32, #tpu.memory_space<vmem>>, vector<1x128x16xf32>
    %26 = vector.shape_cast %25 : vector<1x128x16xf32> to vector<128x16xf32>
    %cst_24 = arith.constant dense<0.000000e+00> : vector<2x16xf32>
    %27 = tpu.matmul %15, %26, %cst_24 {dimension_numbers = #tpu.dot_dimension_numbers<[1], [0], [0], [1], [0, 0, 1, 1], [], []>} : vector<2x128xf32>, vector<128x16xf32>, vector<2x16xf32> -> vector<2x16xf32>
    %c4 = arith.constant 4 : index
    %c0_25 = arith.constant 0 : index
    %c0_26 = arith.constant 0 : index
    %28 = vector.load %arg5[%c4, %c0_25, %c0_26] : memref<7x128x16xf32, #tpu.memory_space<vmem>>, vector<1x128x16xf32>
    %29 = vector.shape_cast %28 : vector<1x128x16xf32> to vector<128x16xf32>
    %cst_27 = arith.constant dense<0.000000e+00> : vector<2x16xf32>
    %30 = tpu.matmul %15, %29, %cst_27 {dimension_numbers = #tpu.dot_dimension_numbers<[1], [0], [0], [1], [0, 0, 1, 1], [], []>} : vector<2x128xf32>, vector<128x16xf32>, vector<2x16xf32> -> vector<2x16xf32>
    %c5 = arith.constant 5 : index
    %c0_28 = arith.constant 0 : index
    %c0_29 = arith.constant 0 : index
    %31 = vector.load %arg5[%c5, %c0_28, %c0_29] : memref<7x128x16xf32, #tpu.memory_space<vmem>>, vector<1x128x16xf32>
    %32 = vector.shape_cast %31 : vector<1x128x16xf32> to vector<128x16xf32>
    %cst_30 = arith.constant dense<0.000000e+00> : vector<2x16xf32>
    %33 = tpu.matmul %15, %32, %cst_30 {dimension_numbers = #tpu.dot_dimension_numbers<[1], [0], [0], [1], [0, 0, 1, 1], [], []>} : vector<2x128xf32>, vector<128x16xf32>, vector<2x16xf32> -> vector<2x16xf32>
    %c6 = arith.constant 6 : index
    %c0_31 = arith.constant 0 : index
    %c0_32 = arith.constant 0 : index
    %34 = vector.load %arg5[%c6, %c0_31, %c0_32] : memref<7x128x16xf32, #tpu.memory_space<vmem>>, vector<1x128x16xf32>
    %35 = vector.shape_cast %34 : vector<1x128x16xf32> to vector<128x16xf32>
    %cst_33 = arith.constant dense<0.000000e+00> : vector<2x16xf32>
    %36 = tpu.matmul %15, %35, %cst_33 {dimension_numbers = #tpu.dot_dimension_numbers<[1], [0], [0], [1], [0, 0, 1, 1], [], []>} : vector<2x128xf32>, vector<128x16xf32>, vector<2x16xf32> -> vector<2x16xf32>
    %37 = arith.maximumf %18, %21 : vector<2x16xf32>
    %38 = arith.maximumf %37, %24 : vector<2x16xf32>
    %39 = arith.maximumf %38, %27 : vector<2x16xf32>
    %40 = arith.maximumf %39, %30 : vector<2x16xf32>
    %41 = arith.maximumf %40, %33 : vector<2x16xf32>
    %42 = arith.maximumf %41, %36 : vector<2x16xf32>
    %43 = arith.subf %18, %42 : vector<2x16xf32>
    %44 = math.exp %43 : vector<2x16xf32>
    %45 = arith.subf %21, %42 : vector<2x16xf32>
    %46 = math.exp %45 : vector<2x16xf32>
    %47 = arith.addf %44, %46 : vector<2x16xf32>
    %48 = arith.subf %24, %42 : vector<2x16xf32>
    %49 = math.exp %48 : vector<2x16xf32>
    %50 = arith.addf %47, %49 : vector<2x16xf32>
    %51 = arith.subf %27, %42 : vector<2x16xf32>
    %52 = math.exp %51 : vector<2x16xf32>
    %53 = arith.addf %50, %52 : vector<2x16xf32>
    %54 = arith.subf %30, %42 : vector<2x16xf32>
    %55 = math.exp %54 : vector<2x16xf32>
    %56 = arith.addf %53, %55 : vector<2x16xf32>
    %57 = arith.subf %33, %42 : vector<2x16xf32>
    %58 = math.exp %57 : vector<2x16xf32>
    %59 = arith.addf %56, %58 : vector<2x16xf32>
    %60 = arith.subf %36, %42 : vector<2x16xf32>
    %61 = math.exp %60 : vector<2x16xf32>
    %62 = arith.addf %59, %61 : vector<2x16xf32>
    %63 = math.log %62 : vector<2x16xf32>
    %64 = arith.addf %42, %63 : vector<2x16xf32>
    %c0_34 = arith.constant 0 : index
    %c0_35 = arith.constant 0 : index
    %65 = vector.load %arg6[%c0_34, %c0_35] : memref<16x128xf32, #tpu.memory_space<vmem>>, vector<16x128xf32>
    %cst_36 = arith.constant dense<0.000000e+00> : vector<2x128xf32>
    %66 = tpu.matmul %64, %65, %cst_36 {dimension_numbers = #tpu.dot_dimension_numbers<[1], [0], [0], [1], [0, 0, 1, 1], [], []>} : vector<2x16xf32>, vector<16x128xf32>, vector<2x128xf32> -> vector<2x128xf32>
    %67 = arith.subf %15, %66 : vector<2x128xf32>
    %cst_37 = arith.constant 0.000000e+00 : f32
    %68 = vector.broadcast %cst_37 : f32 to vector<2x128xf32>
    %69 = arith.minimumf %15, %68 : vector<2x128xf32>
    %70 = math.absf %15 : vector<2x128xf32>
    %cst_38 = arith.constant 0.000000e+00 : f32
    %71 = vector.broadcast %cst_38 : f32 to vector<2x128xf32>
    %72 = arith.subf %71, %70 : vector<2x128xf32>
    %73 = math.exp %72 : vector<2x128xf32>
    %cst_39 = arith.constant 1.000000e+00 : f32
    %74 = vector.broadcast %cst_39 : f32 to vector<2x128xf32>
    %75 = arith.addf %74, %73 : vector<2x128xf32>
    %76 = math.log %75 : vector<2x128xf32>
    %77 = arith.subf %69, %76 : vector<2x128xf32>
    %c0_40 = arith.constant 0 : index
    %c0_41 = arith.constant 0 : index
    %78 = vector.load %arg7[%c0_40, %c0_41] : memref<1x128xf32, #tpu.memory_space<vmem>>, vector<1x128xf32>
    %cst_42 = arith.constant 0.000000e+00 : f32
    %79 = vector.broadcast %cst_42 : f32 to vector<1x128xf32>
    %80 = arith.cmpf one, %78, %79 : vector<1x128xf32>
    %81 = vector.shape_cast %80 : vector<1x128xi1> to vector<1x128xi1>
    %82 = vector.broadcast %81 : vector<1x128xi1> to vector<2x128xi1>
    %83 = arith.select %82, %67, %77 : vector<2x128xi1>, vector<2x128xf32>
    %c0_43 = arith.constant 0 : index
    %c0_44 = arith.constant 0 : index
    %84 = vector.load %arg8[%c0_43, %c0_44] : memref<2x128xf32, #tpu.memory_space<vmem>>, vector<2x128xf32>
    tpu.vector_store %arg8[%c0_43, %c0_44], %83 {strides = array<i32>} : memref<2x128xf32, #tpu.memory_space<vmem>>, vector<2x128xf32>,
    return
  }
}

</mosaic_0001>

<bundles_post_ra>
// kernel: tpu_custom_call.1
= control target key start
LH: loop header
LB: loop body
LE: loop exit
PB: predicated region body
PF: predicated region fallthrough
CT: control target
= control target key end

     0   :  { %v1712_v2 = vmov 0.0|0.0   ;;  %vm1713_vm0 = vmmov 0   ;;  %v1714_v4 = vmov 0.0   ;;  %s2256_s0 = inlined_call_operand.vmem [shape: f32[2,24], index: 0, kind: input, shape index: {}]   ;;  %s2257_s1 = inlined_call_operand.vmem [shape: f32[24,64], index: 1, kind: input, shape index: {}]   ;;  %s2258_s2 = inlined_call_operand.vmem [shape: f32[1,64], index: 2, kind: input, shape index: {}]   ;;  %s2259_s3 = inlined_call_operand.vmem [shape: f32[64,128], index: 3, kind: input, shape index: {}]   ;;  %s2260_s4 = inlined_call_operand.vmem [shape: f32[1,128], index: 4, kind: input, shape index: {}]   ;;  %s2261_s5 = inlined_call_operand.vmem [shape: f32[7,128,16], index: 5, kind: input, shape index: {}]   ;;  %s2262_s6 = inlined_call_operand.vmem [shape: f32[16,128], index: 6, kind: input, shape index: {}]   ;;  %s2263_s7 = inlined_call_operand.vmem [shape: f32[1,128], index: 7, kind: input, shape index: {}]   ;;  %s2264_s8 = inlined_call_operand.hbm [shape: f32[2,128], index: 8, kind: output, shape index: {}]  }
   0x1   :  { %v31_v0 = vld [vmem:[%s2257_s1] sm:$0xff]  ;;  %v32_v1 = vld [vmem:[%s2257_s1 + $0x8] sm:$0xff]  ;;  %1477 = vmatprep.subr.bf16.mxu1 %v1712_v2  ;;  %1203 = vmatprep.mubr.msk.f32.mxu1 %vm1713_vm0, %v1714_v4 }
   0x2   :  { %v1478_v3 = vpack.c.bf16 %v32_v1, %v31_v0  ;;  %v118_v5 = vld [vmem:[%s2259_s3] sm:$0xff]  ;;  %v119_v6 = vld [vmem:[%s2259_s3 + $0x8] sm:$0xff]  ;;  %1492 = vmatprep.subr.bf16.mxu0 %v1712_v2  ;;  %1257 = vmatprep.mubr.msk.f32.mxu0 %vm1713_vm0, %v1714_v4 }
   0x4   :  { %1479 = vmatpush3.bf16.msra.mxu1 %v1478_v3 }
   0x5   :  { %13 = vsyncpa [#allocation3], 0  ;;  %1201 = vmatprep.subr.mxu1 %v1714_v4  ;;  %v33_v7 = vld [vmem:[%s2257_s1 + $0x10] sm:$0xff]  ;;  %v30_v8 = vld [vmem:[%s2256_s0] sm:$0x3]  ;;  %vm41_vm1 = vcmask 195584   ;;  %v1481_v9 = vpack.c.bf16 %v119_v6, %v118_v5 }
   0x6   :  { %v120_v10 = vld [vmem:[%s2259_s3 + $0x10] sm:$0xff]  ;;  %v121_v11 = vld [vmem:[%s2259_s3 + $0x18] sm:$0xff]  ;;  %v122_v13 = vld [vmem:[%s2259_s3 + $0x20] sm:$0xff]  ;;  %vm133_vm3 = vcmask 523264   ;;  %vm853_vm4 = vcmask 130048   ;;  %s1716_s1 = smov [#allocation2]  }
   0x7   :  { %v1484_v12 = vpack.c.bf16 %v121_v11, %v120_v10  ;;  %v123_v14 = vld [vmem:[%s2259_s3 + $0x28] sm:$0xff]  ;;  %v124_v16 = vld [vmem:[%s2259_s3 + $0x30] sm:$0xff]  ;;  %v125_v17 = vld [vmem:[%s2259_s3 + $0x38] sm:$0xff]  ;;  %s953_s21 = sshll.u32 %s1716_s1, 4  ;;  %s954_s21 = int_to_ptr.vmem [resolvable:$true] %s953_s21 }
   0x8   :  { %1202 = vmatpush3.msra.mxu1 %v33_v7  ;;  %v1487_v15 = vpack.c.bf16 %v123_v14, %v122_v13  ;;  %v1490_v18 = vpack.c.bf16 %v125_v17, %v124_v16  ;;  %v207_v19 = vld [vmem:[%s2261_s5] sm:$0xff]  ;;  %v208_v20 = vld [vmem:[%s2261_s5 + $0x8] sm:$0xff]  ;;  %v209_v22 = vld [vmem:[%s2261_s5 + $0x10] sm:$0xff]  ;;  %p1693_p1 = scmp.lt.s32.totalorder %s954_s21, %s954_s21 }
   0x9   :  { %1204 = vmatmul.mubr.msk.f32.vlgmr.msra.gmra.mrb[0].mxu1 %vm41_vm1, %v30_v8  ;;  %1480 = vmatprep.subr.bf16.mxu1 %v1712_v2  ;;  %v1493_v21 = vpack.c.bf16 %v208_v20, %v207_v19  ;;  %v210_v23 = vld [vmem:[%s2261_s5 + $0x18] sm:$0xff]  ;;  %v211_v25 = vld [vmem:[%s2261_s5 + $0x20] sm:$0xff]  ;;  %v212_v26 = vld [vmem:[%s2261_s5 + $0x28] sm:$0xff] }
   0xa   :  { %1482 = vmatpush3.bf16.msra.mxu1 %v1481_v9  ;;  %1222 = vmatprep.mubr.msk.f32.mxu1 %vm1713_vm0, %v1714_v4  ;;  %v1496_v24 = vpack.c.bf16 %v210_v23, %v209_v22  ;;  %v1499_v27 = vpack.c.bf16 %v212_v26, %v211_v25  ;;  %v213_v28 = vld [vmem:[%s2261_s5 + $0x30] sm:$0xff]  ;;  %v214_v29 = vld [vmem:[%s2261_s5 + $0x38] sm:$0xff]  ;;  %v215_v31 = vld [vmem:[%s2261_s5 + $0x40] sm:$0xff] }
   0xb   :  { %1483 = vmatprep.subr.bf16.mxu1 %v1712_v2  ;;  %1494 = vmatpush3.bf16.msra.mxu0 %v1493_v21  ;;  %v1502_v30 = vpack.c.bf16 %v214_v29, %v213_v28  ;;  %v216_v32 = vld [vmem:[%s2261_s5 + $0x48] sm:$0xff]  ;;  %v217_v34 = vld [vmem:[%s2261_s5 + $0x50] sm:$0xff]  ;;  %v218_v35 = vld [vmem:[%s2261_s5 + $0x58] sm:$0xff] }
   0xc   :  { %1495 = vmatprep.subr.bf16.mxu0 %v1712_v2  ;;  %v1505_v33 = vpack.c.bf16 %v216_v32, %v215_v31  ;;  %v1508_v36 = vpack.c.bf16 %v218_v35, %v217_v34  ;;  %v219_v37 = vld [vmem:[%s2261_s5 + $0x60] sm:$0xff]  ;;  %v220_v38 = vld [vmem:[%s2261_s5 + $0x68] sm:$0xff]  ;;  %v221_v40 = vld [vmem:[%s2261_s5 + $0x70] sm:$0xff] }
   0xd   :  { %v1511_v39 = vpack.c.bf16 %v220_v38, %v219_v37  ;;  %v222_v41 = vld [vmem:[%s2261_s5 + $0x78] sm:$0xff]  ;;  %v961_v43 = vld [vmem:[%s2258_s2] ss:$0 sm:$0xff]  ;;  %v966_v46 = vld [vmem:[%s2261_s5 + $0x88] sm:$0xff] }
   0xe   :  { %1485 = vmatpush3.bf16.msra.mxu1 %v1484_v12  ;;  %v1514_v42 = vpack.c.bf16 %v222_v41, %v221_v40  ;;  %v965_v45 = vld [vmem:[%s2261_s5 + $0x80] sm:$0xff]  ;;  %v967_v51 = vld [vmem:[%s2261_s5 + $0x90] sm:$0xff]  ;;  %v968_v52 = vld [vmem:[%s2261_s5 + $0x98] sm:$0xff] }
   0xf   :  { %1486 = vmatprep.subr.bf16.mxu1 %v1712_v2  ;;  %1497 = vmatpush3.bf16.msra.mxu0 %v1496_v24  ;;  %v1517_v50 = vpack.c.bf16 %v966_v46, %v965_v45  ;;  %v1520_v54 = vpack.c.bf16 %v968_v52, %v967_v51  ;;  %v969_v55 = vld [vmem:[%s2261_s5 + $0xa0] sm:$0xff]  ;;  %v970_v56 = vld [vmem:[%s2261_s5 + $0xa8] sm:$0xff]  ;;  %v971_v58 = vld [vmem:[%s2261_s5 + $0xb0] sm:$0xff] }
  0x10   :  { %1498 = vmatprep.subr.bf16.mxu0 %v1712_v2  ;;  %v1523_v57 = vpack.c.bf16 %v970_v56, %v969_v55  ;;  %v972_v59 = vld [vmem:[%s2261_s5 + $0xb8] sm:$0xff]  ;;  %v973_v61 = vld [vmem:[%s2261_s5 + $0xc0] sm:$0xff]  ;;  %v974_v62 = vld [vmem:[%s2261_s5 + $0xc8] sm:$0xff] }
  0x11   :  { %v1526_v60 = vpack.c.bf16 %v972_v59, %v971_v58  ;;  %v1529_v63 = vpack.c.bf16 %v974_v62, %v973_v61  ;;  %v975_v0 = vld [vmem:[%s2261_s5 + $0xd0] sm:$0xff]  ;;  %v976_v1 = vld [vmem:[%s2261_s5 + $0xd8] sm:$0xff]  ;;  %v977_v5 = vld [vmem:[%s2261_s5 + $0xe0] sm:$0xff] }
  0x12   :  { %1488 = vmatpush3.bf16.msra.mxu1 %v1487_v15  ;;  %v1532_v3 = vpack.c.bf16 %v976_v1, %v975_v0  ;;  %v978_v6 = vld [vmem:[%s2261_s5 + $0xe8] sm:$0xff]  ;;  %v979_v8 = vld [vmem:[%s2261_s5 + $0xf0] sm:$0xff]  ;;  %v980_v9 = vld [vmem:[%s2261_s5 + $0xf8] sm:$0xff] }
  0x13   :  { %1489 = vmatprep.subr.bf16.mxu1 %v1712_v2  ;;  %1500 = vmatpush3.bf16.msra.mxu0 %v1499_v27  ;;  %v1535_v7 = vpack.c.bf16 %v978_v6, %v977_v5  ;;  %v1538_v10 = vpack.c.bf16 %v980_v9, %v979_v8  ;;  %v981_v11 = vld [vmem:[%s2261_s5 + $0x100] sm:$0xff]  ;;  %v982_v12 = vld [vmem:[%s2261_s5 + $0x108] sm:$0xff]  ;;  %v983_v19 = vld [vmem:[%s2261_s5 + $0x110] sm:$0xff] }
  0x14   :  { %1501 = vmatprep.subr.bf16.mxu0 %v1712_v2  ;;  %v997_v13 = vld [vmem:[%s2261_s5 + $0x180] sm:$0xff]  ;;  %v998_v14 = vld [vmem:[%s2261_s5 + $0x188] sm:$0xff]  ;;  %v1541_v17 = vpack.c.bf16 %v982_v12, %v981_v11  ;;  %v984_v22 = vld [vmem:[%s2261_s5 + $0x118] sm:$0xff] }
  0x15   :  { %v963_v15 = vld [vmem:[%s2260_s4] ss:$0 sm:$0xff]  ;;  %v999_v23 = vld [vmem:[%s2261_s5 + $0x190] sm:$0xff]  ;;  %v1000_v24 = vld [vmem:[%s2261_s5 + $0x198] sm:$0xff]  ;;  %v1544_v25 = vpack.c.bf16 %v984_v22, %v983_v19 }
  0x16   :  { %1491 = vmatpush3.bf16.msra.mxu1 %v1490_v18  ;;  %v1565_v18 = vpack.c.bf16 %v998_v14, %v997_v13  ;;  %v1568_v26 = vpack.c.bf16 %v1000_v24, %v999_v23  ;;  %v985_v27 = vld [vmem:[%s2261_s5 + $0x120] sm:$0xff]  ;;  %v986_v28 = vld [vmem:[%s2261_s5 + $0x128] sm:$0xff]  ;;  %v988_v34 = vld [vmem:[%s2261_s5 + $0x138] sm:$0xff] }
  0x17   :  { %1516 = vmatprep.subr.bf16.mxu1 %v1712_v2  ;;  %1503 = vmatpush3.bf16.msra.mxu0 %v1502_v30  ;;  %v1001_v29 = vld [vmem:[%s2261_s5 + $0x1a0] sm:$0xff]  ;;  %v1002_v30 = vld [vmem:[%s2261_s5 + $0x1a8] sm:$0xff]  ;;  %v1547_v31 = vpack.c.bf16 %v986_v28, %v985_v27  ;;  %v1003_v35 = vld [vmem:[%s2261_s5 + $0x1b0] sm:$0xff] }
  0x18   :  { %1504 = vmatprep.subr.bf16.mxu0 %v1712_v2  ;;  %v1571_v32 = vpack.c.bf16 %v1002_v30, %v1001_v29  ;;  %v990_v40 = vld [vmem:[%s2261_s5 + $0x148] sm:$0xff]  ;;  %v1005_v41 = vld [vmem:[%s2261_s5 + $0x1c0] sm:$0xff]  ;;  %v991_v45 = vld [vmem:[%s2261_s5 + $0x150] sm:$0xff] }
  0x19   :  { %v992_v46 = vld [vmem:[%s2261_s5 + $0x158] sm:$0xff]  ;;  %v993_v51 = vld [vmem:[%s2261_s5 + $0x160] sm:$0xff]  ;;  %v994_v52 = vld [vmem:[%s2261_s5 + $0x168] sm:$0xff] }
  0x1a   :  { %v1559_v55 = vpack.c.bf16 %v994_v52, %v993_v51  ;;  %v996_v58 = vld [vmem:[%s2261_s5 + $0x178] sm:$0xff]  ;;  %v1011_v59 = vld [vmem:[%s2261_s5 + $0x1f0] sm:$0xff]  ;;  %v1014_v0 = vld [vmem:[%s2261_s5 + $0x208] sm:$0xff] }
  0x1b   :  { %1506 = vmatpush3.bf16.msra.mxu0 %v1505_v33  ;;  %v987_v33 = vld [vmem:[%s2261_s5 + $0x130] sm:$0xff]  ;;  %v1029_v1 = vld [vmem:[%s2261_s5 + $0x280] sm:$0xff]  ;;  %v1016_v8 = vld [vmem:[%s2261_s5 + $0x218] sm:$0xff] }
  0x1c   :  { %1507 = vmatprep.subr.bf16.mxu0 %v1712_v2  ;;  %v1550_v37 = vpack.c.bf16 %v988_v34, %v987_v33  ;;  %v1031_v9 = vld [vmem:[%s2261_s5 + $0x290] sm:$0xff]  ;;  %v1017_v13 = vld [vmem:[%s2261_s5 + $0x220] sm:$0xff]  ;;  %v1018_v14 = vld [vmem:[%s2261_s5 + $0x228] sm:$0xff] }
  0x1d   :  { %v1019_v19 = vld [vmem:[%s2261_s5 + $0x230] sm:$0xff]  ;;  %v1036_v23 = vld [vmem:[%s2261_s5 + $0x2b8] sm:$0xff]  ;;  %v1022_v27 = vld [vmem:[%s2261_s5 + $0x248] sm:$0xff] }
  0x1e   :  { %v1035_v22 = vld [vmem:[%s2261_s5 + $0x2b0] sm:$0xff]  ;;  %v1037_v28 = vld [vmem:[%s2261_s5 + $0x2c0] sm:$0xff]  ;;  %v1038_v29 = vld [vmem:[%s2261_s5 + $0x2c8] sm:$0xff] }
  0x1f   :  { %1509 = vmatpush3.bf16.msra.mxu0 %v1508_v36  ;;  %v1004_v36 = vld [vmem:[%s2261_s5 + $0x1b8] sm:$0xff]  ;;  %v1039_v34 = vld [vmem:[%s2261_s5 + $0x2d0] sm:$0xff]  ;;  %v1046_v51 = vld [vmem:[%s2261_s5 + $0x308] sm:$0xff] }
  0x20   :  { %1510 = vmatprep.subr.bf16.mxu0 %v1712_v2  ;;  %v1574_v38 = vpack.c.bf16 %v1004_v36, %v1003_v35  ;;  %v1024_v33 = vld [vmem:[%s2261_s5 + $0x258] sm:$0xff] }
  0x21   :  { %v1040_v35 = vld [vmem:[%s2261_s5 + $0x2d8] sm:$0xff] }
  0x23   :  { %1512 = vmatpush3.bf16.msra.mxu0 %v1511_v39  ;;  %v989_v39 = vld [vmem:[%s2261_s5 + $0x140] sm:$0xff] }
  0x24   :  { %1513 = vmatprep.subr.bf16.mxu0 %v1712_v2 }
  0x27   :  { %1515 = vmatpush3.bf16.msra.mxu0 %v1514_v42  ;;  %v1006_v42 = vld [vmem:[%s2261_s5 + $0x1c8] sm:$0xff] }
  0x28   :  { %1540 = vmatprep.subr.bf16.mxu0 %v1712_v2 }
  0xdc   :  { %v111_v44 = vpop.f32.mrb[0].mxu1 }
  0xdd   :  { %v112_v47 = vadd.f32 %v961_v43, %v111_v44  ;;  %v1205_v48 = vpop.f32.mrb[1].mxu1  ;;  %v1553_v43 = vpack.c.bf16 %v990_v40, %v989_v39  ;;  %v1577_v44 = vpack.c.bf16 %v1006_v42, %v1005_v41  ;;  %v1026_v39 = vld [vmem:[%s2261_s5 + $0x268] sm:$0xff]  ;;  %v1041_v40 = vld [vmem:[%s2261_s5 + $0x2e0] sm:$0xff] }
  0xde   :  { %v1008_v48 = vld [vmem:[%s2261_s5 + $0x1d8] sm:$0xff]  ;;  %v1042_v41 = vld [vmem:[%s2261_s5 + $0x2e8] sm:$0xff] }
  0xdf   :  { %vm115_vm2 = vcmp.gt.f32.partialorder %v112_v47, 0.0  ;;  %v116_v49 = vmul.f32 0.01, %v112_v47 }
  0xe1   :  { %v117_v53 = vsel %vm115_vm2, %v112_v47, %v116_v49  ;;  %v1007_v47 = vld [vmem:[%s2261_s5 + $0x1d0] sm:$0xff]  ;;  %v1556_v49 = vpack.c.bf16 %v992_v46, %v991_v45  ;;  %v1028_v45 = vld [vmem:[%s2261_s5 + $0x278] sm:$0xff] }
  0xe2   :  { %1223 = vmatmul.mubr.msk.f32.vlgmr.msra.gmra.mrb[2].mxu1 %vm133_vm3, %v117_v53  ;;  %v1009_v53 = vld [vmem:[%s2261_s5 + $0x1e0] sm:$0xff]  ;;  %v1043_v46 = vld [vmem:[%s2261_s5 + $0x2f0] sm:$0xff] }
  0xe3   :  { %1518 = vmatpush3.bf16.msra.mxu1 %v1517_v50  ;;  %1292 = vmatprep.mubr.msk.f32.mxu1 %vm1713_vm0, %v1714_v4  ;;  %v1580_v50 = vpack.c.bf16 %v1008_v48, %v1007_v47  ;;  %v1044_v47 = vld [vmem:[%s2261_s5 + $0x2f8] sm:$0xff] }
  0xe4   :  { %1519 = vmatprep.subr.bf16.mxu1 %v1712_v2 }
  0xe7   :  { %1521 = vmatpush3.bf16.msra.mxu1 %v1520_v54  ;;  %v1010_v54 = vld [vmem:[%s2261_s5 + $0x1e8] sm:$0xff] }
  0xe8   :  { %1522 = vmatprep.subr.bf16.mxu1 %v1712_v2  ;;  %v1583_v56 = vpack.c.bf16 %v1010_v54, %v1009_v53  ;;  %v1047_v53 = vld [vmem:[%s2261_s5 + $0x310] sm:$0xff]  ;;  %v1048_v54 = vld [vmem:[%s2261_s5 + $0x318] sm:$0xff] }
  0xeb   :  { %1524 = vmatpush3.bf16.msra.mxu1 %v1523_v57  ;;  %v995_v57 = vld [vmem:[%s2261_s5 + $0x170] sm:$0xff] }
  0xec   :  { %1525 = vmatprep.subr.bf16.mxu1 %v1712_v2  ;;  %v1562_v61 = vpack.c.bf16 %v996_v58, %v995_v57  ;;  %v1050_v57 = vld [vmem:[%s2261_s5 + $0x328] sm:$0xff] }
  0xef   :  { %1527 = vmatpush3.bf16.msra.mxu1 %v1526_v60  ;;  %v1012_v60 = vld [vmem:[%s2261_s5 + $0x1f8] sm:$0xff] }
  0xf0   :  { %1528 = vmatprep.subr.bf16.mxu1 %v1712_v2  ;;  %v1586_v62 = vpack.c.bf16 %v1012_v60, %v1011_v59  ;;  %v1051_v59 = vld [vmem:[%s2261_s5 + $0x330] sm:$0xff]  ;;  %v1052_v60 = vld [vmem:[%s2261_s5 + $0x338] sm:$0xff] }
  0xf3   :  { %1530 = vmatpush3.bf16.msra.mxu1 %v1529_v63  ;;  %v1013_v63 = vld [vmem:[%s2261_s5 + $0x200] sm:$0xff] }
  0xf4   :  { %1531 = vmatprep.subr.bf16.mxu1 %v1712_v2  ;;  %v1589_v5 = vpack.c.bf16 %v1014_v0, %v1013_v63  ;;  %v1055_v0 = vld [vmem:[%s2261_s5 + $0x350] sm:$0xff] }
  0xf7   :  { %1533 = vmatpush3.bf16.msra.mxu1 %v1532_v3  ;;  %v1030_v3 = vld [vmem:[%s2261_s5 + $0x288] sm:$0xff] }
  0xf8   :  { %1534 = vmatprep.subr.bf16.mxu1 %v1712_v2  ;;  %v1613_v6 = vpack.c.bf16 %v1030_v3, %v1029_v1  ;;  %v1056_v1 = vld [vmem:[%s2261_s5 + $0x358] sm:$0xff] }
  0xf9   :  { %v1652_v3 = vpack.c.bf16 %v1056_v1, %v1055_v0 }
  0xfb   :  { %1536 = vmatpush3.bf16.msra.mxu1 %v1535_v7  ;;  %v1015_v7 = vld [vmem:[%s2261_s5 + $0x210] sm:$0xff] }
  0xfc   :  { %1537 = vmatprep.subr.bf16.mxu1 %v1712_v2  ;;  %v1592_v11 = vpack.c.bf16 %v1016_v8, %v1015_v7  ;;  %v1059_v8 = vld [vmem:[%s2261_s5 + $0x370] sm:$0xff] }
  0xff   :  { %1539 = vmatpush3.bf16.msra.mxu1 %v1538_v10  ;;  %v1032_v10 = vld [vmem:[%s2261_s5 + $0x298] sm:$0xff] }
 0x100   :  { %1564 = vmatprep.subr.bf16.mxu1 %v1712_v2  ;;  %v1616_v12 = vpack.c.bf16 %v1032_v10, %v1031_v9  ;;  %v1060_v9 = vld [vmem:[%s2261_s5 + $0x378] sm:$0xff] }
 0x101   :  { %v1658_v10 = vpack.c.bf16 %v1060_v9, %v1059_v8 }
 0x1b5   :  { %v203_v16 = vpop.f32.mrb[2].mxu1 }
 0x1b6   :  { %v1947_v20 = vadd.f32 %v963_v15, %v203_v16  ;;  %v1224_v21 = vpop.f32.mrb[3].mxu1  ;;  %v1033_v15 = vld [vmem:[%s2261_s5 + $0x2a0] sm:$0xff]  ;;  %v1034_v16 = vld [vmem:[%s2261_s5 + $0x2a8] sm:$0xff] }
 0x1b7   :  { %v1020_v21 = vld [vmem:[%s2261_s5 + $0x238] sm:$0xff] }
 0x1b8   :  { %1258 = vmatmul.mubr.f32.vlgmr.msra.gmra.mrb[0].mxu0 %v1947_v20  ;;  %1293 = vmatmul.mubr.f32.vlgmr.msra.gmra.mrb[4].mxu1 %v1947_v20  ;;  %v1598_v24 = vpack.c.bf16 %v1020_v21, %v1019_v19 }
 0x1b9   :  { %1542 = vmatpush3.bf16.msra.mxu0 %v1541_v17  ;;  %1566 = vmatpush3.bf16.msra.mxu1 %v1565_v18  ;;  %v1595_v17 = vpack.c.bf16 %v1018_v14, %v1017_v13  ;;  %v1619_v18 = vpack.c.bf16 %v1034_v16, %v1033_v15 }
 0x1ba   :  { %1543 = vmatprep.subr.bf16.mxu0 %v1712_v2  ;;  %1567 = vmatprep.subr.bf16.mxu1 %v1712_v2 }
 0x1bb   :  { %1327 = vmatprep.mubr.msk.f32.mxu0 %vm1713_vm0, %v1714_v4  ;;  %1362 = vmatprep.mubr.msk.f32.mxu1 %vm1713_vm0, %v1714_v4 }
 0x1bd   :  { %1545 = vmatpush3.bf16.msra.mxu0 %v1544_v25  ;;  %1569 = vmatpush3.bf16.msra.mxu1 %v1568_v26  ;;  %v1622_v25 = vpack.c.bf16 %v1036_v23, %v1035_v22  ;;  %v1021_v26 = vld [vmem:[%s2261_s5 + $0x240] sm:$0xff] }
 0x1be   :  { %1546 = vmatprep.subr.bf16.mxu0 %v1712_v2  ;;  %1570 = vmatprep.subr.bf16.mxu1 %v1712_v2  ;;  %v1601_v30 = vpack.c.bf16 %v1022_v27, %v1021_v26 }
 0x1c1   :  { %1548 = vmatpush3.bf16.msra.mxu0 %v1547_v31  ;;  %1572 = vmatpush3.bf16.msra.mxu1 %v1571_v32  ;;  %v1625_v31 = vpack.c.bf16 %v1038_v29, %v1037_v28  ;;  %v1023_v32 = vld [vmem:[%s2261_s5 + $0x250] sm:$0xff] }
 0x1c2   :  { %1549 = vmatprep.subr.bf16.mxu0 %v1712_v2  ;;  %1573 = vmatprep.subr.bf16.mxu1 %v1712_v2  ;;  %v1604_v36 = vpack.c.bf16 %v1024_v33, %v1023_v32 }
 0x1c5   :  { %1551 = vmatpush3.bf16.msra.mxu0 %v1550_v37  ;;  %1575 = vmatpush3.bf16.msra.mxu1 %v1574_v38  ;;  %v1628_v37 = vpack.c.bf16 %v1040_v35, %v1039_v34  ;;  %v1025_v38 = vld [vmem:[%s2261_s5 + $0x260] sm:$0xff] }
 0x1c6   :  { %1552 = vmatprep.subr.bf16.mxu0 %v1712_v2  ;;  %1576 = vmatprep.subr.bf16.mxu1 %v1712_v2  ;;  %v1607_v42 = vpack.c.bf16 %v1026_v39, %v1025_v38 }
 0x1c9   :  { %1554 = vmatpush3.bf16.msra.mxu0 %v1553_v43  ;;  %1578 = vmatpush3.bf16.msra.mxu1 %v1577_v44  ;;  %v1631_v43 = vpack.c.bf16 %v1042_v41, %v1041_v40  ;;  %v1027_v44 = vld [vmem:[%s2261_s5 + $0x270] sm:$0xff] }
 0x1ca   :  { %1555 = vmatprep.subr.bf16.mxu0 %v1712_v2  ;;  %1579 = vmatprep.subr.bf16.mxu1 %v1712_v2  ;;  %v1610_v48 = vpack.c.bf16 %v1028_v45, %v1027_v44 }
 0x1cd   :  { %1557 = vmatpush3.bf16.msra.mxu0 %v1556_v49  ;;  %1581 = vmatpush3.bf16.msra.mxu1 %v1580_v50  ;;  %v1634_v49 = vpack.c.bf16 %v1044_v47, %v1043_v46  ;;  %v1045_v50 = vld [vmem:[%s2261_s5 + $0x300] sm:$0xff] }
 0x1ce   :  { %1558 = vmatprep.subr.bf16.mxu0 %v1712_v2  ;;  %1582 = vmatprep.subr.bf16.mxu1 %v1712_v2  ;;  %v1637_v52 = vpack.c.bf16 %v1046_v51, %v1045_v50 }
 0x1d1   :  { %1560 = vmatpush3.bf16.msra.mxu0 %v1559_v55  ;;  %1584 = vmatpush3.bf16.msra.mxu1 %v1583_v56  ;;  %v1640_v55 = vpack.c.bf16 %v1048_v54, %v1047_v53  ;;  %v1049_v56 = vld [vmem:[%s2261_s5 + $0x320] sm:$0xff] }
 0x1d2   :  { %1561 = vmatprep.subr.bf16.mxu0 %v1712_v2  ;;  %1585 = vmatprep.subr.bf16.mxu1 %v1712_v2  ;;  %v1643_v58 = vpack.c.bf16 %v1050_v57, %v1049_v56 }
 0x1d5   :  { %1563 = vmatpush3.bf16.msra.mxu0 %v1562_v61  ;;  %1587 = vmatpush3.bf16.msra.mxu1 %v1586_v62  ;;  %v1646_v61 = vpack.c.bf16 %v1052_v60, %v1051_v59  ;;  %v1054_v62 = vld [vmem:[%s2261_s5 + $0x348] sm:$0xff] }
 0x1d6   :  { %1588 = vmatprep.subr.bf16.mxu0 %v1712_v2  ;;  %1612 = vmatprep.subr.bf16.mxu1 %v1712_v2 }
 0x1d8   :  { %1328 = vmatmul.mubr.f32.vlgmr.msra.gmra.mrb[2].mxu0 %v1947_v20  ;;  %1363 = vmatmul.mubr.f32.vlgmr.msra.gmra.mrb[6].mxu1 %v1947_v20 }
 0x1d9   :  { %1590 = vmatpush3.bf16.msra.mxu0 %v1589_v5  ;;  %1614 = vmatpush3.bf16.msra.mxu1 %v1613_v6  ;;  %v1057_v5 = vld [vmem:[%s2261_s5 + $0x360] sm:$0xff]  ;;  %v1058_v6 = vld [vmem:[%s2261_s5 + $0x368] sm:$0xff] }
 0x1da   :  { %1591 = vmatprep.subr.bf16.mxu0 %v1712_v2  ;;  %1615 = vmatprep.subr.bf16.mxu1 %v1712_v2  ;;  %v1655_v7 = vpack.c.bf16 %v1058_v6, %v1057_v5  ;;  %v940_v6 = vlaneseq }
 0x1db   :  { %1397 = vmatprep.mubr.msk.f32.mxu0 %vm1713_vm0, %v1714_v4  ;;  %1432 = vmatprep.mubr.msk.f32.mxu1 %vm1713_vm0, %v1714_v4 }
 0x1dc   :  { %v941_v8 = vshrl.u32 %v940_v6, 7 }
 0x1dd   :  { %1593 = vmatpush3.bf16.msra.mxu0 %v1592_v11  ;;  %1617 = vmatpush3.bf16.msra.mxu1 %v1616_v12  ;;  %v851_v11 = vld [vmem:[%s2262_s6] sm:$0xff]  ;;  %v852_v12 = vld [vmem:[%s2262_s6 + $0x8] sm:$0xff] }
 0x1de   :  { %1594 = vmatprep.subr.bf16.mxu0 %v1712_v2  ;;  %1618 = vmatprep.subr.bf16.mxu1 %v1712_v2  ;;  %v1661_v15 = vpack.c.bf16 %v852_v12, %v851_v11  ;;  %v942_v9 = vsub.s32 0, %v941_v8 }
 0x1e1   :  { %1596 = vmatpush3.bf16.msra.mxu0 %v1595_v17  ;;  %1620 = vmatpush3.bf16.msra.mxu1 %v1619_v18 }
 0x1e2   :  { %1597 = vmatprep.subr.bf16.mxu0 %v1712_v2  ;;  %1621 = vmatprep.subr.bf16.mxu1 %v1712_v2 }
 0x1e5   :  { %1599 = vmatpush3.bf16.msra.mxu0 %v1598_v24  ;;  %1623 = vmatpush3.bf16.msra.mxu1 %v1622_v25 }
 0x1e6   :  { %1600 = vmatprep.subr.bf16.mxu0 %v1712_v2  ;;  %1624 = vmatprep.subr.bf16.mxu1 %v1712_v2 }
 0x1e9   :  { %1602 = vmatpush3.bf16.msra.mxu0 %v1601_v30  ;;  %1626 = vmatpush3.bf16.msra.mxu1 %v1625_v31 }
 0x1ea   :  { %1603 = vmatprep.subr.bf16.mxu0 %v1712_v2  ;;  %1627 = vmatprep.subr.bf16.mxu1 %v1712_v2 }
 0x1ed   :  { %1605 = vmatpush3.bf16.msra.mxu0 %v1604_v36  ;;  %1629 = vmatpush3.bf16.msra.mxu1 %v1628_v37 }
 0x1ee   :  { %1606 = vmatprep.subr.bf16.mxu0 %v1712_v2  ;;  %1630 = vmatprep.subr.bf16.mxu1 %v1712_v2 }
 0x1f1   :  { %1608 = vmatpush3.bf16.msra.mxu0 %v1607_v42  ;;  %1632 = vmatpush3.bf16.msra.mxu1 %v1631_v43 }
 0x1f2   :  { %1609 = vmatprep.subr.bf16.mxu0 %v1712_v2  ;;  %1633 = vmatprep.subr.bf16.mxu1 %v1712_v2 }
 0x1f5   :  { %1611 = vmatpush3.bf16.msra.mxu0 %v1610_v48  ;;  %1635 = vmatpush3.bf16.msra.mxu1 %v1634_v49 }
 0x1f6   :  { %1636 = vmatprep.subr.bf16.mxu0 %v1712_v2  ;;  %1660 = vmatprep.subr.bf16.mxu1 %v1712_v2 }
 0x1f8   :  { %1398 = vmatmul.mubr.f32.vlgmr.msra.gmra.mrb[4].mxu0 %v1947_v20  ;;  %1433 = vmatmul.mubr.f32.vlgmr.msra.gmra.mrb[8].mxu1 %v1947_v20 }
 0x1f9   :  { %1638 = vmatpush3.bf16.msra.mxu0 %v1637_v52  ;;  %1467 = vmatprep.mubr.msk.f32.mxu0 %vm1713_vm0, %v1714_v4 }
 0x1fa   :  { %1639 = vmatprep.subr.bf16.mxu0 %v1712_v2  ;;  %1474 = vmatprep.mubr.msk.f32.mxu1 %vm1713_vm0, %v1714_v4  ;;  %v1053_v4 = vld [vmem:[%s2261_s5 + $0x340] sm:$0xff] }
 0x1fb   :  { %v1649_v63 = vpack.c.bf16 %v1054_v62, %v1053_v4  ;;  %1662 = vmatpush3.bf16.msra.mxu1 %v1661_v15  ;;  %v928_v15 = vmin.f32 %v1947_v20, 0.0 }
 0x1fd   :  { %1641 = vmatpush3.bf16.msra.mxu0 %v1640_v55 }
 0x1fe   :  { %1642 = vmatprep.subr.bf16.mxu0 %v1712_v2 }
 0x201   :  { %1644 = vmatpush3.bf16.msra.mxu0 %v1643_v58 }
 0x202   :  { %1645 = vmatprep.subr.bf16.mxu0 %v1712_v2 }
 0x205   :  { %1647 = vmatpush3.bf16.msra.mxu0 %v1646_v61 }
 0x206   :  { %1648 = vmatprep.subr.bf16.mxu0 %v1712_v2 }
 0x209   :  { %1650 = vmatpush3.bf16.msra.mxu0 %v1649_v63  ;;  %v929_v63 = vand.u32 2147483647, %v1947_v20 }
 0x20a   :  { %1651 = vmatprep.subr.bf16.mxu0 %v1712_v2 }
 0x20b   :  { %v930_v0 = vsub.f32 0.0, %v929_v63 }
 0x20d   :  { %1653 = vmatpush3.bf16.msra.mxu0 %v1652_v3  ;;  %v931_v1 = vmul.f32 1.442695, %v930_v0 }
 0x20e   :  { %1654 = vmatprep.subr.bf16.mxu0 %v1712_v2 }
 0x211   :  { %1656 = vmatpush3.bf16.msra.mxu0 %v1655_v7  ;;  %v937_v7 = vld [vmem:[%s2263_s7] sm:$0x1]  ;;  %s1688_s7 = scalar_lea.vmem %s954_s21, 32 }
 0x212   :  { %1657 = vmatprep.subr.bf16.mxu0 %v1712_v2  ;;  %vm938_vm5 = vcmp.ne.f32.partialorder %v937_v7, 0.0  ;;  %p1689_p0 = scmp.ne.s32.totalorder %s954_s21, %s1688_s7  ;;  %p1694_p2 = scmp.lt.s32.totalorder %s1688_s7, %s1688_s7 }
 0x214   :  { %p1695_p3 = por %p1694_p2, %p1693_p1 }
 0x215   :  { %1659 = vmatpush3.bf16.msra.mxu0 %v1658_v10  ;;  %v1715_v10 = vmov 0  }
 0x216   :  { %v939_v11 = vsel %vm938_vm5, 1, %v1715_v10  ;;  %p1696_p4 = pnand %p1695_p3, %p1689_p0 }
 0x218   :  { %1468 = vmatmul.mubr.f32.vlgmr.msra.gmra.mrb[6].mxu0 %v1947_v20 }
 0x28b   :  { %v289_v13 = vpop.f32.mrb[0].mxu0  ;;  %v376_v14 = vpop.f32.mrb[4].mxu1 }
 0x28c   :  { %v815_v16 = vmax.f32 %v289_v13, %v376_v14  ;;  %v1259_v17 = vpop.f32.mrb[1].mxu0  ;;  %v1294_v18 = vpop.f32.mrb[5].mxu1 }
 0x2ab   :  { %v463_v19 = vpop.f32.mrb[2].mxu0  ;;  %v550_v2 = vpop.f32.mrb[6].mxu1 }
 0x2ac   :  { %v816_v21 = vmax.f32 %v815_v16, %v463_v19  ;;  %v1329_v22 = vpop.f32.mrb[3].mxu0  ;;  %v1364_v23 = vpop.f32.mrb[7].mxu1 }
 0x2ae   :  { %v817_v24 = vmax.f32 %v816_v21, %v550_v2 }
 0x2cb   :  { %v637_v25 = vpop.f32.mrb[4].mxu0  ;;  %v724_v26 = vpop.f32.mrb[8].mxu1 }
 0x2cc   :  { %v818_v27 = vmax.f32 %v817_v24, %v637_v25  ;;  %v1399_v28 = vpop.f32.mrb[5].mxu0  ;;  %v1434_v29 = vpop.f32.mrb[9].mxu1 }
 0x2ce   :  { %v819_v30 = vmax.f32 %v818_v27, %v724_v26 }
 0x2eb   :  { %v811_v31 = vpop.f32.mrb[6].mxu0 }
 0x2ec   :  { %v820_v32 = vmax.f32 %v819_v30, %v811_v31  ;;  %v1469_v33 = vpop.f32.mrb[7].mxu0 }
 0x2ee   :  { %v821_v34 = vsub.f32 %v289_v13, %v820_v32  ;;  %v824_v35 = vsub.f32 %v376_v14, %v820_v32  ;;  %v828_v36 = vsub.f32 %v463_v19, %v820_v32  ;;  %v832_v37 = vsub.f32 %v550_v2, %v820_v32 }
 0x2ef   :  { %v836_v38 = vsub.f32 %v637_v25, %v820_v32  ;;  %v840_v39 = vsub.f32 %v724_v26, %v820_v32  ;;  %v844_v40 = vsub.f32 %v811_v31, %v820_v32  ;;  %v943_v13 = vrot.slane %v939_v11, %v942_v9 }
 0x2f0   :  { %v822_v41 = vmul.f32 1.442695, %v821_v34  ;;  %v825_v42 = vmul.f32 1.442695, %v824_v35  ;;  %v829_v43 = vmul.f32 1.442695, %v828_v36 }
 0x2f1   :  { %v833_v44 = vmul.f32 1.442695, %v832_v37  ;;  %v837_v45 = vmul.f32 1.442695, %v836_v38  ;;  %v841_v46 = vmul.f32 1.442695, %v840_v39 }
 0x2f2   :  { %1668 = vpow2.f32 %v822_v41  ;;  %v845_v47 = vmul.f32 1.442695, %v844_v40  ;;  %vm944_vm6 = vcmp.eq.s32.totalorder %v943_v13, 1 }
 0x2f3   :  { %1670 = vpow2.f32 %v825_v42 }
 0x2f4   :  { %1672 = vpow2.f32 %v829_v43 }
 0x2f5   :  { %1674 = vpow2.f32 %v833_v44 }
 0x2f6   :  { %1676 = vpow2.f32 %v837_v45 }
 0x2f7   :  { %1678 = vpow2.f32 %v841_v46 }
 0x2f8   :  { %1680 = vpow2.f32 %v845_v47 }
 0x2fc   :  { %v1669_v48 = vpop.eup %1668 }
 0x2fd   :  { %v1671_v49 = vpop.eup %1670 }
 0x2fe   :  { %v827_v50 = vadd.f32 %v1671_v49, %v1669_v48  ;;  %v1673_v51 = vpop.eup %1672 }
 0x2ff   :  { %v1675_v53 = vpop.eup %1674 }
 0x300   :  { %v831_v52 = vadd.f32 %v1673_v51, %v827_v50  ;;  %v1677_v55 = vpop.eup %1676 }
 0x301   :  { %v1679_v57 = vpop.eup %1678 }
 0x302   :  { %v835_v54 = vadd.f32 %v1675_v53, %v831_v52  ;;  %v1681_v59 = vpop.eup %1680 }
 0x304   :  { %v839_v56 = vadd.f32 %v1677_v55, %v835_v54 }
 0x306   :  { %v843_v58 = vadd.f32 %v1679_v57, %v839_v56 }
 0x308   :  { %v847_v60 = vadd.f32 %v1681_v59, %v843_v58 }
 0x30a   :  { %1682 = vlog2.f32 %v847_v60 }
 0x30b   :  { %1684 = vpow2.f32 %v931_v1 }
 0x314   :  { %v1683_v61 = vpop.eup %1682 }
 0x315   :  { %v849_v4 = vmul.f32 0.6931472, %v1683_v61  ;;  %v1685_v3 = vpop.eup %1684 }
 0x316   :  { %v933_v5 = vadd.f32 1.0, %v1685_v3 }
 0x317   :  { %v850_v62 = vadd.f32 %v849_v4, %v820_v32 }
 0x318   :  { %1686 = vlog2.f32 %v933_v5 }
 0x319   :  { %1475 = vmatmul.mubr.msk.f32.vlgmr.msra.gmra.mrb[10].mxu1 %vm853_vm4, %v850_v62 }
 0x322   :  { %v1687_v12 = vpop.eup %1686 }
 0x323   :  { %v935_v14 = vmul.f32 0.6931472, %v1687_v12 }
 0x325   :  { %v936_v19 = vsub.f32 %v928_v15, %v935_v14 }
 0x3ec   :  { %v923_v16 = vpop.f32.mrb[10].mxu1 }
 0x3ed   :  { %v927_v17 = vsub.f32 %v1947_v20, %v923_v16  ;;  %v1476_v18 = vpop.f32.mrb[11].mxu1 }
 0x3ef   :  { %v945_v2 = vsel %vm944_vm6, %v927_v17, %v936_v19 }
 0x3f0   :  { %946 = vst [vmem:[#allocation2] sm:$0x3] %v945_v2 }
 0x3f1   :  { %1699 = shalt.err (!%p1696_p4)
}
 0x3f2   :  { %s1700_s24 = scalar_lea.hbm %s2264_s8, 32 }
 0x3f3   :  { %p1701_p5 = scmp.ne.s32.totalorder %s2264_s8, %s1700_s24  ;;  %p1704_p6 = scmp.lt.u32.totalorder %s1700_s24, %s2264_s8 }
 0x3f5   :  { %p1706_p7 = pnand %p1704_p6, %p1701_p5 }
 0x3f7   :  { %1709 = shalt.err (!%p1706_p7)
}
 0x3f8   :  { %956 = dma.vmem_to_hbm [thread:$0]  %s954_s21, 32, %s2264_s8, [#allocation3]  }
 0x3f9   :  { %1710 = dma.done.wait [#allocation3], 32  }
 0x3fa   :  { %1711 = vsyncadd [#allocation3], 4294967264 }
 0x3fb   :  { %960 = vsyncpa [#allocation3], 1 }

</bundles_post_ra>
